<compile_context>
chip_gen: v7x
topology: tpu7x:2x2x1
jax: 0.10.0
libtpu: 0.0.40
codegen_flags: <defaults>
</compile_context>

<pallas_src>
import functools

import jax
import jax.numpy as jnp
from jax.experimental import pallas as pl
from jax.experimental.pallas import tpu as pltpu


def _conv1x1_sigmoid_kernel(w_ref, x_ref, o_ref):
    # w_ref: (K, C_in)             resident 1x1-conv weight (tiny)
    # x_ref: (b_blk, C_in, tile_hw) pixel slab, pixels on the lane axis
    # o_ref: (b_blk, K, tile_hw)    lane-dense output slab
    w = w_ref[...]
    for b in range(x_ref.shape[0]):  # tiny static unroll over the batch block
        z = jnp.dot(w, x_ref[b], preferred_element_type=jnp.float32)
        o_ref[b] = jax.nn.sigmoid(z).astype(o_ref.dtype)


def _round_up(x, m):
    return ((x + m - 1) // m) * m


def _default_vmem_budget_bytes():
    # Conservative per-generation double-buffered block budget, kept below
    # every generation's scoped-VMEM default (16 MiB v5e, 32 MiB v6e/v7x).
    try:
        kind = jax.devices()[0].device_kind.lower()
    except Exception:
        kind = ""
    if ("v6" in kind) or ("v7" in kind):
        return 24 * 1024 * 1024
    return 12 * 1024 * 1024  # v5e / unknown: safe under the 16 MiB default


def _choose_tiling(B, C_in, K, HW, dtype_bytes, vmem_budget_bytes):
    """Pick (tile_hw, b_blk) so each grid step moves multi-MiB slabs while the
    double-buffered in+out blocks stay under `vmem_budget_bytes`."""
    k_pad = _round_up(K, 8)
    col_bytes = (C_in + k_pad) * dtype_bytes  # in+out bytes per pixel column

    # Largest lane tile (multiple of 128) fitting the budget at b_blk = 1.
    max_tile = max(128, (vmem_budget_bytes // (2 * col_bytes)) // 128 * 128)
    tile_hw = HW if HW <= max_tile else max_tile  # full extent when it fits
    n_hw = pl.cdiv(HW, tile_hw)

    # Fold batch elements into each block: collapse tiny problems entirely,
    # otherwise target ~4 MiB of x per step (per-step DMA >> 0.35 us overhead).
    total_x = B * C_in * HW * dtype_bytes
    step_x = C_in * tile_hw * dtype_bytes
    if total_x <= 2 * 1024 * 1024:
        want = B
    else:
        want = max(1, min(B, (4 * 1024 * 1024) // max(step_x, 1)))
    want = min(want, 8)  # keep the in-kernel unroll small
    while want > 1 and 2 * want * col_bytes * tile_hw > vmem_budget_bytes:
        want -= 1
    # Largest divisor of B <= want: exact batch blocks, no padded batch work.
    b_blk = next(d for d in range(want, 0, -1) if B % d == 0)
    n_b = pl.cdiv(B, b_blk)

    # v7x has two TensorCores: for non-tiny problems keep >= 2 parallel steps.
    if total_x > 2 * 1024 * 1024 and n_b * n_hw < 2:
        if B >= 2:
            b_blk = next(d for d in range((B + 1) // 2, 0, -1) if B % d == 0)
        elif HW > 256:
            tile_hw = max(128, _round_up(pl.cdiv(HW, 2), 128))

    return tile_hw, b_blk


@functools.partial(jax.jit, static_argnames=("tile_hw", "b_blk"))
def _post_processing_impl(x_nchw, weight_kc, *, tile_hw, b_blk):
    B, C_in, H, W = x_nchw.shape
    K = weight_kc.shape[0]
    HW = H * W

    # Free (no data movement) view: (B, C_in, H, W) -> (B, C_in, H*W).
    x3 = x_nchw.reshape(B, C_in, HW)
    grid = (pl.cdiv(B, b_blk), pl.cdiv(HW, tile_hw))

    out3 = pl.pallas_call(
        _conv1x1_sigmoid_kernel,
        out_shape=jax.ShapeDtypeStruct((B, K, HW), x_nchw.dtype),
        grid_spec=pltpu.PrefetchScalarGridSpec(
            num_scalar_prefetch=0,
            grid=grid,
            in_specs=[
                pl.BlockSpec((K, C_in), lambda b, t: (0, 0)),
                pl.BlockSpec((b_blk, C_in, tile_hw), lambda b, t: (b, 0, t)),
            ],
            out_specs=pl.BlockSpec((b_blk, K, tile_hw), lambda b, t: (b, 0, t)),
        ),
        compiler_params=pltpu.CompilerParams(
            dimension_semantics=("parallel", "parallel"),
        ),
    )(weight_kc, x3)

    # Free reshape back to NCHW.
    return out3.reshape(B, K, H, W)


def post_processing_standard(x_nchw, weight_kc, *, vmem_budget_bytes=None):
    """sigmoid(Conv2d(C_in, K, kernel=(1,1), bias=False)(x)).

    x_nchw:    (B, C_in, H, W)  PyTorch NCHW layout, kept as-is (no transposes)
    weight_kc: (K, C_in)        conv weight with the (1,1) spatial dims squeezed
    """
    B, C_in, H, W = x_nchw.shape
    K = weight_kc.shape[0]
    if vmem_budget_bytes is None:
        vmem_budget_bytes = _default_vmem_budget_bytes()
    tile_hw, b_blk = _choose_tiling(
        B, C_in, K, H * W, jnp.dtype(x_nchw.dtype).itemsize, vmem_budget_bytes
    )
    return _post_processing_impl(x_nchw, weight_kc, tile_hw=tile_hw, b_blk=b_blk)


if __name__ == "__main__":
    # parameters['post_processing_dim'] = 32, parameters['num_classes'] = 4
    num_classes = 4
    key = jax.random.PRNGKey(0)

    def run_case(B, C_in, H, W, subkey):
        kx, kw = jax.random.split(subkey)
        x = jax.random.normal(kx, (B, C_in, H, W), dtype=jnp.float32)
        bound = 1.0 / jnp.sqrt(jnp.float32(C_in))
        weight = jax.random.uniform(
            kw, (num_classes, C_in), dtype=jnp.float32, minval=-bound, maxval=bound
        )
        out = post_processing_standard(x, weight)
        jax.block_until_ready(out)
        ref = jax.nn.sigmoid(jnp.einsum("bchw,kc->bkhw", x, weight))
        assert out.shape == (B, num_classes, H, W)
        assert jnp.allclose(out, ref, atol=1e-5, rtol=1e-5)

    k1, k2 = jax.random.split(key)
    # Shipped config: B=2, C_in=32, 16x16 -> single-step grid (batch-blocked).
    run_case(2, 32, 16, 16, k1)
    # Odd batch / non-128-multiple HW: exercises divisor-based batch blocking.
    run_case(3, 32, 20, 20, k2)

    print("KERNEL_OK")
</pallas_src>

<mosaic_0001>
module attributes {stable_mosaic.version = 11 : i64} {
  func.func @_conv1x1_sigmoid_kernel(%arg0: i32, %arg1: i32, %arg2: memref<4x32xf32, #tpu.memory_space<vmem>>, %arg3: memref<2x32x256xf32, #tpu.memory_space<vmem>>, %arg4: memref<2x4x256xf32, #tpu.memory_space<vmem>>) attributes {dimension_semantics = [#tpu.dimension_semantics<parallel>, #tpu.dimension_semantics<parallel>], iteration_bounds = array<i64: 1, 1>, scalar_prefetch = 0 : i64, scratch_operands = 0 : i64, tpu.core_type = #tpu.core_type<tc>, window_params = [{pipeline_mode = #tpu.pipeline_mode<synchronous>, transform_indices = @transform_0, window_bounds = array<i64: 4, 32>}, {transform_indices = @transform_1, window_bounds = array<i64: 2, 32, 256>}, {transform_indices = @transform_2, window_bounds = array<i64: 2, 4, 256>}]} {
    %c0 = arith.constant 0 : index
    %c0_0 = arith.constant 0 : index
    %0 = vector.load %arg2[%c0, %c0_0] : memref<4x32xf32, #tpu.memory_space<vmem>>, vector<4x32xf32>
    %c0_1 = arith.constant 0 : index
    %c0_2 = arith.constant 0 : index
    %c0_3 = arith.constant 0 : index
    %1 = vector.load %arg3[%c0_1, %c0_2, %c0_3] : memref<2x32x256xf32, #tpu.memory_space<vmem>>, vector<1x32x256xf32>
    %2 = vector.shape_cast %1 : vector<1x32x256xf32> to vector<32x256xf32>
    %cst = arith.constant dense<0.000000e+00> : vector<4x256xf32>
    %3 = tpu.matmul %0, %2, %cst {dimension_numbers = #tpu.dot_dimension_numbers<[1], [0], [0], [1], [0, 0, 1, 1], [], []>} : vector<4x32xf32>, vector<32x256xf32>, vector<4x256xf32> -> vector<4x256xf32>
    %4 = arith.negf %3 : vector<4x256xf32>
    %5 = math.exp %4 : vector<4x256xf32>
    %cst_4 = arith.constant 1.000000e+00 : f32
    %6 = vector.broadcast %cst_4 : f32 to vector<4x256xf32>
    %7 = arith.addf %6, %5 : vector<4x256xf32>
    %8 = arith.divf %6, %7 : vector<4x256xf32>
    %c0_5 = arith.constant 0 : index
    %c0_6 = arith.constant 0 : index
    %c0_7 = arith.constant 0 : index
    %9 = vector.load %arg4[%c0_5, %c0_6, %c0_7] : memref<2x4x256xf32, #tpu.memory_space<vmem>>, vector<1x4x256xf32>
    %10 = vector.shape_cast %9 : vector<1x4x256xf32> to vector<4x256xf32>
    %11 = vector.shape_cast %8 : vector<4x256xf32> to vector<1x4x256xf32>
    tpu.vector_store %arg4[%c0_5, %c0_6, %c0_7], %11 {strides = array<i32>} : memref<2x4x256xf32, #tpu.memory_space<vmem>>, vector<1x4x256xf32>,
    %c1 = arith.constant 1 : index
    %c0_8 = arith.constant 0 : index
    %c0_9 = arith.constant 0 : index
    %12 = vector.load %arg3[%c1, %c0_8, %c0_9] : memref<2x32x256xf32, #tpu.memory_space<vmem>>, vector<1x32x256xf32>
    %13 = vector.shape_cast %12 : vector<1x32x256xf32> to vector<32x256xf32>
    %cst_10 = arith.constant dense<0.000000e+00> : vector<4x256xf32>
    %14 = tpu.matmul %0, %13, %cst_10 {dimension_numbers = #tpu.dot_dimension_numbers<[1], [0], [0], [1], [0, 0, 1, 1], [], []>} : vector<4x32xf32>, vector<32x256xf32>, vector<4x256xf32> -> vector<4x256xf32>
    %15 = arith.negf %14 : vector<4x256xf32>
    %16 = math.exp %15 : vector<4x256xf32>
    %cst_11 = arith.constant 1.000000e+00 : f32
    %17 = vector.broadcast %cst_11 : f32 to vector<4x256xf32>
    %18 = arith.addf %17, %16 : vector<4x256xf32>
    %19 = arith.divf %17, %18 : vector<4x256xf32>
    %c1_12 = arith.constant 1 : index
    %c0_13 = arith.constant 0 : index
    %c0_14 = arith.constant 0 : index
    %20 = vector.load %arg4[%c1_12, %c0_13, %c0_14] : memref<2x4x256xf32, #tpu.memory_space<vmem>>, vector<1x4x256xf32>
    %21 = vector.shape_cast %20 : vector<1x4x256xf32> to vector<4x256xf32>
    %22 = vector.shape_cast %19 : vector<4x256xf32> to vector<1x4x256xf32>
    tpu.vector_store %arg4[%c1_12, %c0_13, %c0_14], %22 {strides = array<i32>} : memref<2x4x256xf32, #tpu.memory_space<vmem>>, vector<1x4x256xf32>,
    return
  }
  func.func @transform_0(%arg0: i32, %arg1: i32) -> (i32, i32) {
    %c0_i32 = arith.constant 0 : i32
    %c0_i32_0 = arith.constant 0 : i32
    %c0_i32_1 = arith.constant 0 : i32
    return %c0_i32, %c0_i32_0 : i32, i32
  }
  func.func @transform_1(%arg0: i32, %arg1: i32) -> (i32, i32, i32) {
    %c0_i32 = arith.constant 0 : i32
    %c0_i32_0 = arith.constant 0 : i32
    return %arg0, %c0_i32, %arg1 : i32, i32, i32
  }
  func.func @transform_2(%arg0: i32, %arg1: i32) -> (i32, i32, i32) {
    %c0_i32 = arith.constant 0 : i32
    %c0_i32_0 = arith.constant 0 : i32
    return %arg0, %c0_i32, %arg1 : i32, i32, i32
  }
}

</mosaic_0001>

<bundles_post_ra>
// kernel: _post_processing_impl.1
= control target key start
LH: loop header
LB: loop body
LE: loop exit
PB: predicated region body
PF: predicated region fallthrough
CT: control target
= control target key end

     0   :  { %v262_v3 = vmov 0.0   ;;  %vm20_vm0 = vcmask 261120   ;;  %s335_s1 = inlined_call_operand.vmem [shape: f32[2,32,256], index: 1, kind: input, shape index: {}]   ;;  %s336_s0 = inlined_call_operand.vmem [shape: f32[4,32], index: 0, kind: input, shape index: {}]   ;;  %s337_s2 = inlined_call_operand.vmem [shape: f32[2,4,256], index: 2, kind: output, shape index: {}]  }
   0x1   :  { %v13_v0 = vld [vmem:[%s335_s1 + $0x8] sm:$0xff]  ;;  %v15_v1 = vld [vmem:[%s335_s1 + $0x18] sm:$0xff]  ;;  %88 = vmatprep.mubr.f32.mxu0 %v262_v3  ;;  %185 = vmatprep.mubr.f32.mxu1 %v262_v3  ;;  %v12_v6 = vld [vmem:[%s335_s1] sm:$0xff] }
   0x2   :  { %v218_v2 = vld [vmem:[%s335_s1 + $0x48] sm:$0xff]  ;;  %v229_v4 = vpack.c.bf16 %v15_v1, %v13_v0  ;;  %v220_v5 = vld [vmem:[%s335_s1 + $0x58] sm:$0xff]  ;;  %v14_v7 = vld [vmem:[%s335_s1 + $0x10] sm:$0xff] }
   0x3   :  { %v237_v8 = vpack.c.bf16 %v220_v5, %v218_v2  ;;  %v231_v9 = vpack.c.bf16 %v14_v7, %v12_v6  ;;  %v217_v10 = vld [vmem:[%s335_s1 + $0x40] sm:$0xff]  ;;  %v219_v11 = vld [vmem:[%s335_s1 + $0x50] sm:$0xff]  ;;  %v17_v12 = vld [vmem:[%s335_s1 + $0x28] sm:$0xff] }
   0x4   :  { %230 = vmatprep.subr.bf16.mxu0 %v229_v4  ;;  %v239_v13 = vpack.c.bf16 %v219_v11, %v217_v10  ;;  %v19_v14 = vld [vmem:[%s335_s1 + $0x38] sm:$0xff]  ;;  %v222_v15 = vld [vmem:[%s335_s1 + $0x68] sm:$0xff]  ;;  %v16_v19 = vld [vmem:[%s335_s1 + $0x20] sm:$0xff] }
   0x5   :  { %v224_v16 = vld [vmem:[%s335_s1 + $0x78] sm:$0xff]  ;;  %238 = vmatprep.subr.bf16.mxu1 %v237_v8  ;;  %232 = vmatpush1.bf16.msra.mxu0 %v231_v9  ;;  %v233_v17 = vpack.c.bf16 %v19_v14, %v17_v12  ;;  %v18_v20 = vld [vmem:[%s335_s1 + $0x30] sm:$0xff]  ;;  %v221_v21 = vld [vmem:[%s335_s1 + $0x60] sm:$0xff] }
   0x6   :  { %v241_v18 = vpack.c.bf16 %v224_v16, %v222_v15  ;;  %240 = vmatpush1.bf16.msra.mxu1 %v239_v13  ;;  %v235_v22 = vpack.c.bf16 %v18_v20, %v16_v19  ;;  %v223_v23 = vld [vmem:[%s335_s1 + $0x70] sm:$0xff]  ;;  %v11_v25 = vld [vmem:[%s336_s0] sm:$0xf] }
   0x7   :  { %234 = vmatprep.subr.bf16.mxu0 %v233_v17  ;;  %v243_v24 = vpack.c.bf16 %v223_v23, %v221_v21 }
   0x8   :  { %242 = vmatprep.subr.bf16.mxu1 %v241_v18 }
   0x9   :  { %236 = vmatpush1.bf16.msra.mxu0 %v235_v22 }
   0xa   :  { %244 = vmatpush1.bf16.msra.mxu1 %v243_v24 }
   0xc   :  { %214 = vmatmul.mubr.msk.f32.vlgmr.msra.gmra.mrb[0].mxu0 %vm20_vm0, %v11_v25 }
   0xd   :  { %225 = vmatmul.mubr.msk.f32.vlgmr.msra.gmra.mrb[0].mxu1 %vm20_vm0, %v11_v25 }
  0xdf   :  { %v90_v26 = vpop.f32.mrb[0].mxu0 }
  0xe0   :  { %v215_v27 = vmul.f32 -1.442695, %v90_v26  ;;  %v187_v28 = vpop.f32.mrb[0].mxu1  ;;  %v92_v29 = vpop.f32.mrb[1].mxu0 }
  0xe1   :  { %v226_v30 = vmul.f32 -1.442695, %v187_v28  ;;  %v216_v31 = vmul.f32 -1.442695, %v92_v29  ;;  %v189_v32 = vpop.f32.mrb[1].mxu1 }
  0xe2   :  { %246 = vpow2.f32 %v215_v27  ;;  %v227_v33 = vmul.f32 -1.442695, %v189_v32 }
  0xe3   :  { %248 = vpow2.f32 %v226_v30 }
  0xe4   :  { %250 = vpow2.f32 %v216_v31 }
  0xe5   :  { %252 = vpow2.f32 %v227_v33 }
  0xec   :  { %v247_v34 = vpop.eup %246 }
  0xed   :  { %v249_v35 = vpop.eup %248  ;;  %v101_v36 = vadd.f32 1.0, %v247_v34 }
  0xee   :  { %v251_v37 = vpop.eup %250  ;;  %v198_v38 = vadd.f32 1.0, %v249_v35 }
  0xef   :  { %v253_v39 = vpop.eup %252  ;;  %254 = vrcp.f32 %v101_v36  ;;  %v102_v40 = vadd.f32 1.0, %v251_v37 }
  0xf0   :  { %256 = vrcp.f32 %v198_v38  ;;  %v199_v41 = vadd.f32 1.0, %v253_v39 }
  0xf1   :  { %258 = vrcp.f32 %v102_v40 }
  0xf2   :  { %260 = vrcp.f32 %v199_v41 }
  0xf9   :  { %v255_v42 = vpop.eup %254 }
  0xfa   :  { %v257_v43 = vpop.eup %256 }
  0xfb   :  { %v259_v44 = vpop.eup %258 }
  0xfc   :  { %v261_v45 = vpop.eup %260  ;;  %v109_v46 = vcombine.low %v255_v42, %v259_v44 }
  0xfd   :  { %v206_v47 = vcombine.low %v257_v43, %v261_v45 }
  0xfe   :  { %111 = vst [vmem:[%s337_s2] sm:$0xff] %v109_v46 }
  0xff   :  { %228 = vst [vmem:[%s337_s2 + $0x8] sm:$0xff] %v206_v47 }

</bundles_post_ra>
